<compile_context>
chip_gen: v7x
topology: tpu7x:2x2x1
jax: 0.10.0
libtpu: 0.0.40
codegen_flags: <defaults>
</compile_context>

<pallas_src>
import functools

import jax
import jax.numpy as jnp
from jax.experimental import pallas as pl
from jax.experimental.pallas import tpu as pltpu


def _pool_kernel(x_ref, o_ref, acc_sum, acc_max, *, S, TS, LW, n_s):
    """Streaming global avg+max pooling over the spatial (lane) axis.

    x_ref:   (1, TC, TS) input tile (channels on sublanes, spatial on lanes)
    o_ref:   (1, TC, 2)  pooled output: [:, 0] = mean, [:, 1] = max
    acc_sum: (TC, LW) f32 scratch — lane-wise running sums
    acc_max: (TC, LW) f32 scratch — lane-wise running maxes
    """
    si = pl.program_id(2)
    n_chunks = TS // LW

    @pl.when(si == 0)
    def _init():
        acc_sum[...] = jnp.zeros_like(acc_sum)
        acc_max[...] = jnp.full_like(acc_max, -jnp.inf)

    def _accumulate(tile_start):
        # tile_start is a static int for the (possibly ragged) last tile and
        # None for interior tiles, so all masking decisions are trace-time.
        s = acc_sum[...]
        m = acc_max[...]
        for k in range(n_chunks):
            if tile_start is None:
                n_valid = LW
            else:
                c0 = tile_start + k * LW
                if c0 >= S:
                    break                      # chunk fully out of bounds
                n_valid = min(LW, S - c0)
            chunk = x_ref[0, :, k * LW:(k + 1) * LW].astype(jnp.float32)
            if n_valid < LW:                   # at most one ragged chunk
                lane = jax.lax.broadcasted_iota(jnp.int32, chunk.shape, 1)
                ok = lane < n_valid
                s = s + jnp.where(ok, chunk, 0.0)
                m = jnp.maximum(m, jnp.where(ok, chunk, -jnp.inf))
            else:                              # hot path: pure VALU add/max
                s = s + chunk
                m = jnp.maximum(m, chunk)
        acc_sum[...] = s
        acc_max[...] = m

    if n_s * TS == S:                          # no ragged tile: single fast path
        _accumulate(None)
    else:
        @pl.when(si < n_s - 1)
        def _interior():
            _accumulate(None)

        @pl.when(si == n_s - 1)
        def _tail():
            _accumulate((n_s - 1) * TS)

    @pl.when(si == n_s - 1)
    def _finalize():
        # Single cross-lane reduce per (batch, channel-block); divide by the
        # true S via a precomputed reciprocal.
        mean = jnp.sum(acc_sum[...], axis=-1, keepdims=True) * (1.0 / S)  # (TC, 1)
        mx = jnp.max(acc_max[...], axis=-1, keepdims=True)                # (TC, 1)
        o_ref[0] = jnp.concatenate([mean, mx], axis=-1).astype(o_ref.dtype)


def channel_attention_3d(x, w1, w2, *, spatial_tile=2048):
    """x: (B, C, D, H, W); w1: (C//r, C); w2: (C, C//r) -> (B, C, 1, 1, 1)."""
    B, C, D, H, W = x.shape
    S = D * H * W
    x_flat = x.reshape(B, C, S)

    # ---- tile sizes (static) --------------------------------------------
    if S >= 128:
        LW = 128                                         # lane-chunk width
        TS = min(spatial_tile, ((S + 127) // 128) * 128)  # multiple of 128
    else:
        LW = S
        TS = S
    n_s = pl.cdiv(S, TS)

    TC = C if (C <= 128 or C % 8 != 0) else 128          # channel block
    n_c = pl.cdiv(C, TC)

    # ---- streaming pooling kernel ---------------------------------------
    pooled = pl.pallas_call(
        functools.partial(_pool_kernel, S=S, TS=TS, LW=LW, n_s=n_s),
        out_shape=jax.ShapeDtypeStruct((B, C, 2), jnp.float32),
        grid_spec=pltpu.PrefetchScalarGridSpec(
            num_scalar_prefetch=0,
            grid=(B, n_c, n_s),
            in_specs=[pl.BlockSpec((1, TC, TS), lambda b, c, s: (b, c, s))],
            # Same block index across the reduction axis -> resident accumulator
            # output, written back to HBM only once per (b, c) block.
            out_specs=pl.BlockSpec((1, TC, 2), lambda b, c, s: (b, c, 0)),
            scratch_shapes=[pltpu.VMEM((TC, LW), jnp.float32),
                            pltpu.VMEM((TC, LW), jnp.float32)],
        ),
        compiler_params=pltpu.CompilerParams(
            dimension_semantics=("parallel", "parallel", "arbitrary"),
            vmem_limit_bytes=32 * 1024 * 1024),
    )(x_flat)

    # ---- shared MLP (1x1x1 convs) + sigmoid: one batched matmul in XLA ---
    avg = pooled[:, :, 0]                                  # (B, C)
    mx = pooled[:, :, 1]                                   # (B, C)
    both = jnp.concatenate([avg, mx], axis=0)              # (2B, C)
    h = jax.nn.relu(both @ w1.astype(jnp.float32).T)       # (2B, C//r)
    o = h @ w2.astype(jnp.float32).T                       # (2B, C)
    att = jax.nn.sigmoid(o[:B] + o[B:]).astype(x.dtype)    # (B, C)
    return att.reshape(B, C, 1, 1, 1)


def _reference(x, w1, w2):
    # pure-JAX reference of the PyTorch forward
    xf = x.astype(jnp.float32)
    avg = jnp.mean(xf, axis=(2, 3, 4))                     # (B, C)
    mx = jnp.max(xf, axis=(2, 3, 4))                       # (B, C)

    def fc(v):
        h = jnp.maximum(v @ w1.T.astype(jnp.float32), 0.0)
        return h @ w2.T.astype(jnp.float32)

    out = jax.nn.sigmoid(fc(avg) + fc(mx))
    return out.reshape(*out.shape, 1, 1, 1).astype(x.dtype)


if __name__ == "__main__":
    B, C = 2, 32
    reduction_ratio = 16
    hidden = C // reduction_ratio

    key = jax.random.PRNGKey(0)
    kx, k1, k2 = jax.random.split(key, 3)

    # Deterministic 1x1x1 Conv3d weights (no bias), collapsed to matrices.
    w1 = jax.random.normal(k1, (hidden, C), dtype=jnp.float32) * (1.0 / C) ** 0.5
    w2 = jax.random.normal(k2, (C, hidden), dtype=jnp.float32) * (1.0 / hidden) ** 0.5

    fn = jax.jit(channel_attention_3d)

    # (8,8,8): single spatial tile; (13,13,13): multi-tile reduction with a
    # ragged (masked) last chunk — exercises the accumulator + masking paths.
    for (D, H, W) in [(8, 8, 8), (13, 13, 13)]:
        x = jax.random.normal(kx, (B, C, D, H, W), dtype=jnp.float32)
        out = jax.block_until_ready(fn(x, w1, w2))
        ref = _reference(x, w1, w2)
        assert out.shape == (B, C, 1, 1, 1)
        assert jnp.allclose(out, ref, atol=1e-5, rtol=1e-5), \
            f"mismatch vs reference for spatial {(D, H, W)}"

    print("KERNEL_OK")
</pallas_src>

<mosaic_0001>
module attributes {stable_mosaic.version = 11 : i64} {
  func.func @_pool_kernel(%arg0: i32, %arg1: i32, %arg2: i32, %arg3: memref<1x32x512xf32, #tpu.memory_space<vmem>>, %arg4: memref<1x32x2xf32, #tpu.memory_space<vmem>>, %arg5: memref<32x128xf32, #tpu.memory_space<vmem>>, %arg6: memref<32x128xf32, #tpu.memory_space<vmem>>) attributes {dimension_semantics = [#tpu.dimension_semantics<parallel>, #tpu.dimension_semantics<parallel>, #tpu.dimension_semantics<arbitrary>], iteration_bounds = array<i64: 2, 1, 1>, scalar_prefetch = 0 : i64, scratch_operands = 2 : i64, tpu.core_type = #tpu.core_type<tc>, window_params = [{transform_indices = @transform_0, window_bounds = array<i64: 1, 32, 512>}, {transform_indices = @transform_1, window_bounds = array<i64: 1, 32, 2>}]} {
    %c0_i32 = arith.constant 0 : i32
    %0 = arith.cmpi eq, %arg2, %c0_i32 : i32
    %1 = arith.extui %0 : i1 to i32
    %c0_i32_0 = arith.constant 0 : i32
    %2 = arith.cmpi ne, %1, %c0_i32_0 : i32
    scf.if %2 {
      %cst = arith.constant 0.000000e+00 : f32
      %26 = vector.broadcast %cst : f32 to vector<32x128xf32>
      %c0_19 = arith.constant 0 : index
      %c0_20 = arith.constant 0 : index
      %27 = vector.load %arg5[%c0_19, %c0_20] : memref<32x128xf32, #tpu.memory_space<vmem>>, vector<32x128xf32>
      tpu.vector_store %arg5[%c0_19, %c0_20], %26 {strides = array<i32>} : memref<32x128xf32, #tpu.memory_space<vmem>>, vector<32x128xf32>,
      %cst_21 = arith.constant 0xFF800000 : f32
      %28 = vector.broadcast %cst_21 : f32 to vector<32x128xf32>
      %c0_22 = arith.constant 0 : index
      %c0_23 = arith.constant 0 : index
      %29 = vector.load %arg6[%c0_22, %c0_23] : memref<32x128xf32, #tpu.memory_space<vmem>>, vector<32x128xf32>
      tpu.vector_store %arg6[%c0_22, %c0_23], %28 {strides = array<i32>} : memref<32x128xf32, #tpu.memory_space<vmem>>, vector<32x128xf32>,
    } else {
    }
    %c0 = arith.constant 0 : index
    %c0_1 = arith.constant 0 : index
    %3 = vector.load %arg5[%c0, %c0_1] : memref<32x128xf32, #tpu.memory_space<vmem>>, vector<32x128xf32>
    %c0_2 = arith.constant 0 : index
    %c0_3 = arith.constant 0 : index
    %4 = vector.load %arg6[%c0_2, %c0_3] : memref<32x128xf32, #tpu.memory_space<vmem>>, vector<32x128xf32>
    %c0_4 = arith.constant 0 : index
    %c0_5 = arith.constant 0 : index
    %c0_6 = arith.constant 0 : index
    %5 = vector.load %arg3[%c0_4, %c0_5, %c0_6] : memref<1x32x512xf32, #tpu.memory_space<vmem>>, vector<1x32x128xf32>
    %6 = vector.shape_cast %5 : vector<1x32x128xf32> to vector<32x128xf32>
    %7 = arith.addf %3, %6 : vector<32x128xf32>
    %8 = arith.maximumf %4, %6 : vector<32x128xf32>
    %c0_7 = arith.constant 0 : index
    %c0_8 = arith.constant 0 : index
    %c128 = arith.constant 128 : index
    %9 = vector.load %arg3[%c0_7, %c0_8, %c128] : memref<1x32x512xf32, #tpu.memory_space<vmem>>, vector<1x32x128xf32>
    %10 = vector.shape_cast %9 : vector<1x32x128xf32> to vector<32x128xf32>
    %11 = arith.addf %7, %10 : vector<32x128xf32>
    %12 = arith.maximumf %8, %10 : vector<32x128xf32>
    %c0_9 = arith.constant 0 : index
    %c0_10 = arith.constant 0 : index
    %c256 = arith.constant 256 : index
    %13 = vector.load %arg3[%c0_9, %c0_10, %c256] : memref<1x32x512xf32, #tpu.memory_space<vmem>>, vector<1x32x128xf32>
    %14 = vector.shape_cast %13 : vector<1x32x128xf32> to vector<32x128xf32>
    %15 = arith.addf %11, %14 : vector<32x128xf32>
    %16 = arith.maximumf %12, %14 : vector<32x128xf32>
    %c0_11 = arith.constant 0 : index
    %c0_12 = arith.constant 0 : index
    %c384 = arith.constant 384 : index
    %17 = vector.load %arg3[%c0_11, %c0_12, %c384] : memref<1x32x512xf32, #tpu.memory_space<vmem>>, vector<1x32x128xf32>
    %18 = vector.shape_cast %17 : vector<1x32x128xf32> to vector<32x128xf32>
    %19 = arith.addf %15, %18 : vector<32x128xf32>
    %20 = arith.maximumf %16, %18 : vector<32x128xf32>
    %c0_13 = arith.constant 0 : index
    %c0_14 = arith.constant 0 : index
    %21 = vector.load %arg5[%c0_13, %c0_14] : memref<32x128xf32, #tpu.memory_space<vmem>>, vector<32x128xf32>
    tpu.vector_store %arg5[%c0_13, %c0_14], %19 {strides = array<i32>} : memref<32x128xf32, #tpu.memory_space<vmem>>, vector<32x128xf32>,
    %c0_15 = arith.constant 0 : index
    %c0_16 = arith.constant 0 : index
    %22 = vector.load %arg6[%c0_15, %c0_16] : memref<32x128xf32, #tpu.memory_space<vmem>>, vector<32x128xf32>
    tpu.vector_store %arg6[%c0_15, %c0_16], %20 {strides = array<i32>} : memref<32x128xf32, #tpu.memory_space<vmem>>, vector<32x128xf32>,
    %c0_i32_17 = arith.constant 0 : i32
    %23 = arith.cmpi eq, %arg2, %c0_i32_17 : i32
    %24 = arith.extui %23 : i1 to i32
    %c0_i32_18 = arith.constant 0 : i32
    %25 = arith.cmpi ne, %24, %c0_i32_18 : i32
    scf.if %25 {
      %c0_19 = arith.constant 0 : index
      %c0_20 = arith.constant 0 : index
      %26 = vector.load %arg5[%c0_19, %c0_20] : memref<32x128xf32, #tpu.memory_space<vmem>>, vector<32x128xf32>
      %cst = arith.constant dense<0.000000e+00> : vector<32xf32>
      %27 = vector.multi_reduction <add>, %26, %cst [1] : vector<32x128xf32> to vector<32xf32>
      %28 = vector.shape_cast %27 : vector<32xf32> to vector<32x1xf32>
      %cst_21 = arith.constant 0.001953125 : f32
      %29 = vector.broadcast %cst_21 : f32 to vector<32x1xf32>
      %30 = arith.mulf %28, %29 : vector<32x1xf32>
      %c0_22 = arith.constant 0 : index
      %c0_23 = arith.constant 0 : index
      %31 = vector.load %arg6[%c0_22, %c0_23] : memref<32x128xf32, #tpu.memory_space<vmem>>, vector<32x128xf32>
      %cst_24 = arith.constant dense<0xFF800000> : vector<32xf32>
      %32 = vector.multi_reduction <maximumf>, %31, %cst_24 [1] : vector<32x128xf32> to vector<32xf32>
      %33 = vector.shape_cast %32 : vector<32xf32> to vector<32x1xf32>
      %34 = tpu.concatenate %30, %33 in 1 : vector<32x1xf32>, vector<32x1xf32> -> vector<32x2xf32>
      %c0_25 = arith.constant 0 : index
      %c0_26 = arith.constant 0 : index
      %c0_27 = arith.constant 0 : index
      %35 = vector.load %arg4[%c0_25, %c0_26, %c0_27] : memref<1x32x2xf32, #tpu.memory_space<vmem>>, vector<1x32x2xf32>
      %36 = vector.shape_cast %35 : vector<1x32x2xf32> to vector<32x2xf32>
      %37 = vector.shape_cast %34 : vector<32x2xf32> to vector<1x32x2xf32>
      tpu.vector_store %arg4[%c0_25, %c0_26, %c0_27], %37 {strides = array<i32>} : memref<1x32x2xf32, #tpu.memory_space<vmem>>, vector<1x32x2xf32>,
    } else {
    }
    return
  }
  func.func @transform_0(%arg0: i32, %arg1: i32, %arg2: i32) -> (i32, i32, i32) {
    %c0_i32 = arith.constant 0 : i32
    return %arg0, %arg1, %arg2 : i32, i32, i32
  }
  func.func @transform_1(%arg0: i32, %arg1: i32, %arg2: i32) -> (i32, i32, i32) {
    %c0_i32 = arith.constant 0 : i32
    %c0_i32_0 = arith.constant 0 : i32
    return %arg0, %arg1, %c0_i32 : i32, i32, i32
  }
}

</mosaic_0001>

<bundles_post_ra>
// kernel: channel_attention_3d.1
= control target key start
LH: loop header
LB: loop body
LE: loop exit
PB: predicated region body
PF: predicated region fallthrough
CT: control target
= control target key end

     0   :  { %s466_s6 = smov 0   ;;  %s468_s7 = smov 0   ;;  %s507_s0 = inlined_call_operand.vmem [shape: f32[2,32,512], index: 0, kind: input, shape index: {}]   ;;  %s508_s1 = inlined_call_operand.vmem [shape: f32[2,32,2], index: 1, kind: output, shape index: {}]  }
   0x1   :  { %s470_s8 = smov 0  }
   0x2 LB: > { %s30_s9 = sadd.s32 1, %s450_s7  ;;  %p399_p0 = scmp.ge.s32.totalorder %s454_s8, 1  ;;  %s454_s8 = sphi %s470_s8, %s11_s8   ;;  %s450_s7 = sphi %s468_s7, %s510_s7   ;;  %s446_s6 = sphi %s466_s6, %s509_s6  }
   0x3   : > { %p32_p1 = scmp.ge.s32.totalorder %s30_s9, 2  ;;  %p123_p2 = scmp.lt.s32.totalorder %s454_s8, 3 }
   0x5   : > { %s512_s9 = smov (%p32_p1, %s30_s9), 0  ;;  %p124_p3 = pnand %p399_p0, %p123_p2 }
   0x6   : > { %p158_p4 = scmp.lt.s32.totalorder (!%p124_p3), %s446_s6, 1  ;;  %vm289_vm0 = vcmask (!%p124_p3), 7168   ;;  %vm294_vm1 = vcmask (!%p124_p3), 15360  }
   0x7   : > { %127 = sbr.rel (%p124_p3) target bundleno = 181 (0xb5), region = 24 }
   0xe   : > { %s514_s6 = smov (!%p158_p4, %s446_s6), 1 }
   0xf   : > { %s406_s10 = sshll.u32 %s514_s6, 7  ;;  %s407_s14 = sshll.u32 %s514_s6, 5 }
  0x10   : > { %s169_s13 = scalar_lea.vmem %s507_s0, %s406_s10  ;;  %s180_s17 = scalar_lea.vmem %s508_s1, %s407_s14 }
  0x11   : > { %v204_v0 = vld [vmem:[%s169_s13 + $0x40] sm:$0xff]  ;;  %v216_v1 = vld [vmem:[%s169_s13 + $0x48] sm:$0xff]  ;;  %v228_v2 = vld [vmem:[%s169_s13 + $0x50] sm:$0xff] }
  0x12   : > { %v220_v3 = vadd.f32 %v216_v1, %v204_v0  ;;  %v202_v4 = vld [vmem:[%s169_s13] sm:$0xff]  ;;  %v214_v5 = vld [vmem:[%s169_s13 + $0x8] sm:$0xff]  ;;  %v240_v6 = vld [vmem:[%s169_s13 + $0x58] sm:$0xff]  ;;  %v224_v32 = vmax.f32 %v204_v0, %v216_v1 }
  0x13   : > { %v218_v7 = vadd.f32 %v214_v5, %v202_v4  ;;  %v226_v8 = vld [vmem:[%s169_s13 + $0x10] sm:$0xff]  ;;  %v205_v9 = vld [vmem:[%s169_s13 + $0x60] sm:$0xff]  ;;  %v238_v11 = vld [vmem:[%s169_s13 + $0x18] sm:$0xff]  ;;  %v222_v19 = vmax.f32 %v202_v4, %v214_v5 }
  0x14   : > { %v232_v10 = vadd.f32 %v228_v2, %v220_v3  ;;  %v217_v12 = vld [vmem:[%s169_s13 + $0x68] sm:$0xff]  ;;  %v229_v13 = vld [vmem:[%s169_s13 + $0x70] sm:$0xff]  ;;  %v203_v16 = vld [vmem:[%s169_s13 + $0x20] sm:$0xff]  ;;  %v236_v37 = vmax.f32 %v224_v32, %v228_v2 }
  0x15   : > { %v230_v14 = vadd.f32 %v226_v8, %v218_v7  ;;  %v221_v15 = vadd.f32 %v217_v12, %v205_v9  ;;  %v215_v17 = vld [vmem:[%s169_s13 + $0x28] sm:$0xff]  ;;  %v227_v18 = vld [vmem:[%s169_s13 + $0x30] sm:$0xff]  ;;  %v241_v21 = vld [vmem:[%s169_s13 + $0x78] sm:$0xff]  ;;  %v225_v29 = vmax.f32 %v205_v9, %v217_v12  ;;  %v234_v31 = vmax.f32 %v222_v19, %v226_v8 }
  0x16   : > { %v244_v20 = vadd.f32 %v240_v6, %v232_v10  ;;  %v219_v22 = vadd.f32 %v215_v17, %v203_v16  ;;  %v223_v23 = vmax.f32 %v203_v16, %v215_v17  ;;  %v239_v26 = vld [vmem:[%s169_s13 + $0x38] sm:$0xff]  ;;  %v248_v39 = vmax.f32 %v236_v37, %v240_v6 }
  0x17   : > { %v242_v24 = vadd.f32 %v238_v11, %v230_v14  ;;  %v233_v25 = vadd.f32 %v229_v13, %v221_v15  ;;  %v237_v35 = vmax.f32 %v225_v29, %v229_v13  ;;  %v246_v36 = vmax.f32 %v234_v31, %v238_v11 }
  0x18   : > { %269 = vadd.xlane.f32.xlu1 %v244_v20  ;;  %v231_v27 = vadd.f32 %v227_v18, %v219_v22  ;;  %v235_v28 = vmax.f32 %v223_v23, %v227_v18 }
  0x19   : > { %265 = vadd.xlane.f32.xlu0 %v242_v24  ;;  %v245_v30 = vadd.f32 %v241_v21, %v233_v25  ;;  %v249_v38 = vmax.f32 %v237_v35, %v241_v21 }
  0x1a   : > { %v243_v33 = vadd.f32 %v239_v26, %v231_v27  ;;  %v247_v34 = vmax.f32 %v235_v28, %v239_v26 }
  0x1c   : > { %271 = vadd.xlane.f32.xlu1 %v245_v30 }
  0x1d   : > { %267 = vadd.xlane.f32.xlu0 %v243_v33 }
  0x20   : > { %283 = vmax.xlane.f32.xlu1 %v247_v34 }
  0x21   : > { %281 = vmax.xlane.f32.xlu0 %v246_v36 }
  0x24   : > { %287 = vmax.xlane.f32.xlu1 %v249_v38 }
  0x25   : > { %285 = vmax.xlane.f32.xlu0 %v248_v39 }
  0xa5   : > { %v270_v40 = vpop.xlane.xlu1 %269 }
  0xa6   : > { %v266_v41 = vpop.xlane.xlu0 %265  ;;  %v275_v51 = vmul.f32 0.001953125, %v270_v40 }
  0xa7   : > { %v273_v45 = vmul.f32 0.001953125, %v266_v41 }
  0xa9   : > { %v272_v42 = vpop.xlane.xlu1 %271 }
  0xaa   : > { %v268_v43 = vpop.xlane.xlu0 %267  ;;  %v276_v50 = vmul.f32 0.001953125, %v272_v42 }
  0xab   : > { %v274_v44 = vmul.f32 0.001953125, %v268_v43 }
  0xad   : > { %v284_v46 = vpop.xlane.xlu1 %283 }
  0xae   : > { %v291_v47 = vsel %vm289_vm0, %v274_v44, %v284_v46  ;;  %v282_v48 = vpop.xlane.xlu0 %281 }
  0xaf   : > { %296 = vst.msk [vmem:[%s180_s17 + $0x8] sm:$0xff] %vm294_vm1, %v291_v47  ;;  %v290_v49 = vsel %vm289_vm0, %v273_v45, %v282_v48 }
  0xb0   : > { %295 = vst.msk [vmem:[%s180_s17] sm:$0xff] %vm294_vm1, %v290_v49 }
  0xb1   : > { %v288_v52 = vpop.xlane.xlu1 %287 }
  0xb2   : > { %v293_v53 = vsel %vm289_vm0, %v276_v50, %v288_v52  ;;  %v286_v54 = vpop.xlane.xlu0 %285 }
  0xb3   : > { %298 = vst.msk [vmem:[%s180_s17 + $0x18] sm:$0xff] %vm294_vm1, %v293_v53  ;;  %v292_v55 = vsel %vm289_vm0, %v275_v51, %v286_v54 }
  0xb4   : > { %297 = vst.msk [vmem:[%s180_s17 + $0x10] sm:$0xff] %vm294_vm1, %v292_v55 }
  0xb5 PF: > { %s11_s8 = sadd.s32 1, %s454_s8   ;;  %s509_s6 = smov %s450_s7 }
  0xb6   : > { %p8_p5 = scmp.ge.s32.totalorder %s11_s8, 4   ;;  %s510_s7 = smov %s512_s9 }
  0xb8   :  { %10 = sbr.rel (!%p8_p5) target bundleno = 2 (0x2), region = 62 }

</bundles_post_ra>
